<compile_context>
chip_gen: v6e
topology: v6e:2x2x1
jax: 0.10.0
libtpu: 0.0.40
codegen_flags: <defaults>
</compile_context>

<pallas_src>
from functools import partial

import jax
import jax.numpy as jnp
from jax.experimental import pallas as pl
from jax.experimental.pallas import tpu as pltpu

_VMEM_LIMIT = 48 * 1024 * 1024
_BN_EPS = 1e-5


def _pick_tile(n, max_tile=2048):
    """Largest multiple of 128 that divides n and is <= max_tile; else full extent."""
    t = min(n, max_tile)
    t = (t // 128) * 128
    while t >= 128:
        if n % t == 0:
            return t
        t -= 128
    return n


# ---------------------------------------------------------------------------
# Fused 1x1-conv (+ folded BN) + bias + ReLU kernels
# ---------------------------------------------------------------------------

def _conv1x1_cf_kernel(x_ref, w_ref, b_ref, o_ref, *, relu):
    # x_ref: (1, Cin, T) channels-first block; w_ref: (Cin, Cout); b_ref: (1, Cout)
    x = x_ref[0]                                                   # (Cin, T)
    y = jax.lax.dot_general(                                       # contract over Cin in-kernel
        x, w_ref[...],
        dimension_numbers=(((0,), (0,)), ((), ())),
        preferred_element_type=jnp.float32)                        # (T, Cout)
    y = y + b_ref[...]
    if relu:
        y = jnp.maximum(y, 0.0)
    o_ref[0] = y.astype(o_ref.dtype)


def _conv1x1_cl_kernel(x_ref, w_ref, b_ref, o_ref, *, relu):
    # x_ref: (1, T, Cin) channels-last block
    x = x_ref[0]                                                   # (T, Cin)
    y = jnp.dot(x, w_ref[...], preferred_element_type=jnp.float32)  # (T, Cout)
    y = y + b_ref[...]
    if relu:
        y = jnp.maximum(y, 0.0)
    o_ref[0] = y.astype(o_ref.dtype)


def conv1x1_bias_act(x, w, b, *, channels_first_in, relu=True, max_tile=2048):
    """1x1 conv (matmul) + bias + optional ReLU.  Returns (B, S, Cout) channels-last.

    x: (B, Cin, S) if channels_first_in else (B, S, Cin);  w: (Cin, Cout);  b: (Cout,)
    """
    if channels_first_in:
        B, Cin, S = x.shape
    else:
        B, S, Cin = x.shape
    Cout = w.shape[1]
    T = _pick_tile(S, max_tile)

    w = w.astype(x.dtype)
    b2 = b.reshape(1, Cout).astype(jnp.float32)

    if channels_first_in:
        x_spec = pl.BlockSpec((1, Cin, T), lambda bi, si: (bi, 0, si))
        kernel = partial(_conv1x1_cf_kernel, relu=relu)
    else:
        x_spec = pl.BlockSpec((1, T, Cin), lambda bi, si: (bi, si, 0))
        kernel = partial(_conv1x1_cl_kernel, relu=relu)

    return pl.pallas_call(
        kernel,
        out_shape=jax.ShapeDtypeStruct((B, S, Cout), x.dtype),
        grid_spec=pltpu.PrefetchScalarGridSpec(
            num_scalar_prefetch=0,
            grid=(B, S // T),
            in_specs=[
                x_spec,
                pl.BlockSpec((Cin, Cout), lambda bi, si: (0, 0)),
                pl.BlockSpec((1, Cout), lambda bi, si: (0, 0)),
            ],
            out_specs=pl.BlockSpec((1, T, Cout), lambda bi, si: (bi, si, 0)),
        ),
        compiler_params=pltpu.CompilerParams(
            dimension_semantics=("parallel", "parallel"),
            vmem_limit_bytes=_VMEM_LIMIT,
        ),
    )(x, w, b2)


# ---------------------------------------------------------------------------
# Object-attention kernel: softmax(Kc^-0.5 * Q K^T) V, tiled over the HW axis
# ---------------------------------------------------------------------------

def _ocr_attention_kernel(q_ref, k_ref, v_ref, ctx_ref, sim_ref, *, scale):
    q = q_ref[0]                                                   # (T, Kc)
    k = k_ref[0]                                                   # (M, Kc)
    v = v_ref[0]                                                   # (M, Kc)

    s = jax.lax.dot_general(                                       # Q @ K^T on the MXU
        q, k, dimension_numbers=(((1,), (1,)), ((), ())),
        preferred_element_type=jnp.float32) * scale                # (T, M), f32

    m = jnp.max(s, axis=-1, keepdims=True)                         # stable softmax over M
    e = jnp.exp(s - m)
    denom = jnp.sum(e, axis=-1, keepdims=True)
    p = e * pl.reciprocal(denom, approx=False)                     # (T, M)

    ctx = jnp.dot(p.astype(v.dtype), v,                            # (T, Kc)
                  preferred_element_type=jnp.float32)

    ctx_ref[0] = ctx.astype(ctx_ref.dtype)
    sim_ref[0] = p.astype(sim_ref.dtype)


def ocr_attention(q, k, v, *, key_channels, max_tile=2048):
    """q: (B, HW, Kc), k: (B, M, Kc), v: (B, M, Kc) -> (context (B,HW,Kc), sim (B,HW,M))."""
    B, HW, Kc = q.shape
    _, M, _ = k.shape
    T = _pick_tile(HW, max_tile)
    scale = float(key_channels) ** -0.5

    return pl.pallas_call(
        partial(_ocr_attention_kernel, scale=scale),
        out_shape=(
            jax.ShapeDtypeStruct((B, HW, Kc), q.dtype),
            jax.ShapeDtypeStruct((B, HW, M), jnp.float32),
        ),
        grid_spec=pltpu.PrefetchScalarGridSpec(
            num_scalar_prefetch=0,
            grid=(B, HW // T),
            in_specs=[
                pl.BlockSpec((1, T, Kc), lambda bi, si: (bi, si, 0)),
                pl.BlockSpec((1, M, Kc), lambda bi, si: (bi, 0, 0)),
                pl.BlockSpec((1, M, Kc), lambda bi, si: (bi, 0, 0)),
            ],
            out_specs=(
                pl.BlockSpec((1, T, Kc), lambda bi, si: (bi, si, 0)),
                pl.BlockSpec((1, T, M), lambda bi, si: (bi, si, 0)),
            ),
        ),
        compiler_params=pltpu.CompilerParams(
            dimension_semantics=("parallel", "parallel"),
            vmem_limit_bytes=_VMEM_LIMIT,
        ),
    )(q, k, v)


# ---------------------------------------------------------------------------
# SpatialOCR_Module forward (inference)
# ---------------------------------------------------------------------------

def _fold_bn(w, gamma, beta, mean, var, eps):
    s = gamma / jnp.sqrt(var + eps)
    return w * s[None, :], beta - mean * s


def spatial_ocr_forward(feats, proxy, params, key_channels, *, ocr_scale=1, max_tile=2048):
    """feats: (B, C, H, W), proxy: (B, C, Mh, Mw) -> (output (B, Cout, H, W), sim (B, HW, M))."""
    # TODO(synk): ocr_scale > 1 path (MaxPool2d + bilinear upsample) not implemented.
    assert ocr_scale == 1, "only scale=1 (module default) is supported"
    B, C, H, W = feats.shape
    _, _, Mh, Mw = proxy.shape
    HW, M = H * W, Mh * Mw

    x_cf = feats.reshape(B, C, HW)        # native NCHW layout, no wrapper transpose
    p_cf = proxy.reshape(B, C, M)

    def cbr(x, name, channels_first_in, relu=True):
        w, gamma, beta, mean, var = params[name]
        w_eff, b_eff = _fold_bn(w, gamma, beta, mean, var, _BN_EPS)
        return conv1x1_bias_act(x, w_eff, b_eff, channels_first_in=channels_first_in,
                                relu=relu, max_tile=max_tile)

    q = cbr(x_cf, "f_pixel1", True)       # (B, HW, Kc)
    q = cbr(q, "f_pixel2", False)         # (B, HW, Kc)
    k = cbr(p_cf, "f_object1", True)      # (B, M, Kc)
    k = cbr(k, "f_object2", False)        # (B, M, Kc)
    v = cbr(p_cf, "f_down", True)         # (B, M, Kc)

    ctx, sim = ocr_attention(q, k, v, key_channels=key_channels, max_tile=max_tile)

    up = cbr(ctx, "f_up", False)          # (B, HW, C)
    out = cbr(up, "head", False)          # (B, HW, Cout)
    # TODO(synk): Dropout2d is identity at inference; training-mode channel dropout omitted.

    out_nchw = jnp.transpose(out, (0, 2, 1)).reshape(B, -1, H, W)
    return out_nchw, sim


# ---------------------------------------------------------------------------
# Pure-JAX reference (literal torch math) + demo
# ---------------------------------------------------------------------------

def _conv_bn_relu_ref(x_cf, w, gamma, beta, mean, var, eps, relu=True):
    y = jnp.einsum("bcs,co->bos", x_cf, w, precision=jax.lax.Precision.HIGHEST)
    y = (y - mean[None, :, None]) / jnp.sqrt(var + eps)[None, :, None] \
        * gamma[None, :, None] + beta[None, :, None]
    if relu:
        y = jnp.maximum(y, 0.0)
    return y


def _reference_forward(feats, proxy, params, key_channels):
    B, C, H, W = feats.shape
    _, _, Mh, Mw = proxy.shape
    x = feats.reshape(B, C, H * W)
    px = proxy.reshape(B, C, Mh * Mw)

    def cbr(x_cf, name, relu=True):
        w, gamma, beta, mean, var = params[name]
        return _conv_bn_relu_ref(x_cf, w, gamma, beta, mean, var, _BN_EPS, relu)

    q = cbr(cbr(x, "f_pixel1"), "f_pixel2")       # (B, Kc, HW)
    k = cbr(cbr(px, "f_object1"), "f_object2")    # (B, Kc, M)
    v = cbr(px, "f_down")                         # (B, Kc, M)

    qT = jnp.transpose(q, (0, 2, 1))              # (B, HW, Kc)
    sim = jnp.einsum("bsk,bkm->bsm", qT, k, precision=jax.lax.Precision.HIGHEST)
    sim = jax.nn.softmax(float(key_channels) ** -0.5 * sim, axis=-1)
    ctx = jnp.einsum("bsm,bkm->bsk", sim, v, precision=jax.lax.Precision.HIGHEST)
    ctx_cf = jnp.transpose(ctx, (0, 2, 1))        # (B, Kc, HW)
    up = cbr(ctx_cf, "f_up")                      # (B, C, HW)
    out = cbr(up, "head")                         # (B, Cout, HW)
    return out.reshape(B, -1, H, W), sim


def make_params(key, C, Kc, Cout):
    shapes = {
        "f_pixel1": (C, Kc), "f_pixel2": (Kc, Kc),
        "f_object1": (C, Kc), "f_object2": (Kc, Kc),
        "f_down": (C, Kc),
        "f_up": (Kc, C),
        "head": (C, Cout),
    }
    params = {}
    for name, (cin, cout) in shapes.items():
        key, kw, kg, kb, km, kv = jax.random.split(key, 6)
        w = jax.random.normal(kw, (cin, cout), jnp.float32) * (float(cin) ** -0.5)
        gamma = 1.0 + 0.1 * jax.random.normal(kg, (cout,), jnp.float32)
        beta = 0.1 * jax.random.normal(kb, (cout,), jnp.float32)
        mean = 0.1 * jax.random.normal(km, (cout,), jnp.float32)
        var = 1.0 + 0.5 * jax.random.uniform(kv, (cout,), jnp.float32)
        params[name] = (w, gamma, beta, mean, var)
    return params


if __name__ == "__main__":
    key = jax.random.PRNGKey(0)
    kp, kf, kx = jax.random.split(key, 3)

    B, C, Kc, Cout, H, W, M = 2, 32, 16, 32, 16, 16, 8   # proxy regions M=8
    params = make_params(kp, C, Kc, Cout)
    feats = jax.random.normal(kf, (B, C, H, W), dtype=jnp.float32)
    proxy = jax.random.normal(kx, (B, C, M, 1), dtype=jnp.float32)

    # max_tile=128 so the HW axis is actually tiled (grid=(B, 2)) at this demo size.
    out, sim = spatial_ocr_forward(feats, proxy, params, key_channels=Kc, max_tile=128)
    out = jax.block_until_ready(out)
    sim = jax.block_until_ready(sim)

    ref_out, ref_sim = _reference_forward(feats, proxy, params, key_channels=Kc)

    assert out.shape == (B, Cout, H, W), out.shape
    assert sim.shape == (B, H * W, M), sim.shape
    assert jnp.allclose(sim, ref_sim, atol=1e-4, rtol=1e-4), "sim_map mismatch vs reference"
    assert jnp.allclose(out, ref_out, atol=1e-3, rtol=1e-3), "output mismatch vs reference"

    print("KERNEL_OK")
</pallas_src>

<mosaic_0001>
module attributes {stable_mosaic.version = 11 : i64} {
  func.func @_conv1x1_cf_kernel(%arg0: i32, %arg1: i32, %arg2: memref<1x32x128xf32, #tpu.memory_space<vmem>>, %arg3: memref<32x16xf32, #tpu.memory_space<vmem>>, %arg4: memref<1x16xf32, #tpu.memory_space<vmem>>, %arg5: memref<1x128x16xf32, #tpu.memory_space<vmem>>) attributes {dimension_semantics = [#tpu.dimension_semantics<parallel>, #tpu.dimension_semantics<parallel>], iteration_bounds = array<i64: 2, 2>, scalar_prefetch = 0 : i64, scratch_operands = 0 : i64, tpu.core_type = #tpu.core_type<tc>, window_params = [{transform_indices = @transform_0, window_bounds = array<i64: 1, 32, 128>}, {pipeline_mode = #tpu.pipeline_mode<synchronous>, transform_indices = @transform_1, window_bounds = array<i64: 32, 16>}, {pipeline_mode = #tpu.pipeline_mode<synchronous>, transform_indices = @transform_2, window_bounds = array<i64: 1, 16>}, {transform_indices = @transform_3, window_bounds = array<i64: 1, 128, 16>}]} {
    %c0 = arith.constant 0 : index
    %c0_0 = arith.constant 0 : index
    %c0_1 = arith.constant 0 : index
    %0 = vector.load %arg2[%c0, %c0_0, %c0_1] : memref<1x32x128xf32, #tpu.memory_space<vmem>>, vector<1x32x128xf32>
    %1 = vector.shape_cast %0 : vector<1x32x128xf32> to vector<32x128xf32>
    %c0_2 = arith.constant 0 : index
    %c0_3 = arith.constant 0 : index
    %2 = vector.load %arg3[%c0_2, %c0_3] : memref<32x16xf32, #tpu.memory_space<vmem>>, vector<32x16xf32>
    %cst = arith.constant dense<0.000000e+00> : vector<128x16xf32>
    %3 = tpu.matmul %1, %2, %cst {dimension_numbers = #tpu.dot_dimension_numbers<[0], [0], [1], [1], [0, 1, 1, 1], [], []>} : vector<32x128xf32>, vector<32x16xf32>, vector<128x16xf32> -> vector<128x16xf32>
    %c0_4 = arith.constant 0 : index
    %c0_5 = arith.constant 0 : index
    %4 = vector.load %arg4[%c0_4, %c0_5] : memref<1x16xf32, #tpu.memory_space<vmem>>, vector<1x16xf32>
    %5 = vector.broadcast %4 : vector<1x16xf32> to vector<128x16xf32>
    %6 = arith.addf %3, %5 : vector<128x16xf32>
    %cst_6 = arith.constant 0.000000e+00 : f32
    %7 = vector.broadcast %cst_6 : f32 to vector<128x16xf32>
    %8 = arith.maximumf %6, %7 : vector<128x16xf32>
    %c0_7 = arith.constant 0 : index
    %c0_8 = arith.constant 0 : index
    %c0_9 = arith.constant 0 : index
    %9 = vector.load %arg5[%c0_7, %c0_8, %c0_9] : memref<1x128x16xf32, #tpu.memory_space<vmem>>, vector<1x128x16xf32>
    %10 = vector.shape_cast %9 : vector<1x128x16xf32> to vector<128x16xf32>
    %11 = vector.shape_cast %8 : vector<128x16xf32> to vector<1x128x16xf32>
    tpu.vector_store %arg5[%c0_7, %c0_8, %c0_9], %11 {strides = array<i32>} : memref<1x128x16xf32, #tpu.memory_space<vmem>>, vector<1x128x16xf32>,
    return
  }
  func.func @transform_0(%arg0: i32, %arg1: i32) -> (i32, i32, i32) {
    %c0_i32 = arith.constant 0 : i32
    %c0_i32_0 = arith.constant 0 : i32
    return %arg0, %c0_i32, %arg1 : i32, i32, i32
  }
  func.func @transform_1(%arg0: i32, %arg1: i32) -> (i32, i32) {
    %c0_i32 = arith.constant 0 : i32
    %c0_i32_0 = arith.constant 0 : i32
    %c0_i32_1 = arith.constant 0 : i32
    return %c0_i32, %c0_i32_0 : i32, i32
  }
  func.func @transform_2(%arg0: i32, %arg1: i32) -> (i32, i32) {
    %c0_i32 = arith.constant 0 : i32
    %c0_i32_0 = arith.constant 0 : i32
    %c0_i32_1 = arith.constant 0 : i32
    return %c0_i32, %c0_i32_0 : i32, i32
  }
  func.func @transform_3(%arg0: i32, %arg1: i32) -> (i32, i32, i32) {
    %c0_i32 = arith.constant 0 : i32
    %c0_i32_0 = arith.constant 0 : i32
    return %arg0, %arg1, %c0_i32 : i32, i32, i32
  }
}

</mosaic_0001>

<bundles_post_ra>
// kernel: tpu_custom_call.1
= control target key start
LH: loop header
LB: loop body
LE: loop exit
PB: predicated region body
PF: predicated region fallthrough
CT: control target
= control target key end

     0   :  { %8 = vsyncpa [#allocation3], 0  ;;  %s1081_s0 = inlined_call_operand.hbm [shape: f32[2,32,256], index: 0, kind: input, shape index: {}]   ;;  %s1082_s1 = inlined_call_operand.vmem [shape: f32[32,16], index: 1, kind: input, shape index: {}]   ;;  %s1083_s2 = inlined_call_operand.vmem [shape: f32[1,16], index: 2, kind: input, shape index: {}]   ;;  %s1084_s3 = inlined_call_operand.vmem [shape: f32[2,256,16], index: 3, kind: output, shape index: {}]  }
   0x1   :  { %10 = vsyncpa [#allocation3 + $0x1], 0  ;;  %s874_s12 = smov 0   ;;  %s876_s13 = smov 0  }
   0x2   :  { %s878_s14 = smov 0   ;;  %s880_s15 = smov 0  }
   0x3   :  { %s882_s16 = smov 0   ;;  %s884_s17 = smov 0  }
   0x4   :  { %s886_s18 = smov 0   ;;  %s888_s19 = smov 0  }
   0x5 LB: > { %s588_s20 = sadd.s32 4294967295, %s848_s19   ;;  %s25_s21 = sadd.s32 1, %s840_s17  ;;  %s848_s19 = sphi %s888_s19, %s16_s19   ;;  %s844_s18 = sphi %s886_s18, %s1094_s18   ;;  %s840_s17 = sphi %s884_s17, %s1093_s17   ;;  %s836_s16 = sphi %s882_s16, %s1092_s16   ;;  %s832_s15 = sphi %s880_s15, %s1091_s15   ;;  %s828_s14 = sphi %s878_s14, %s1090_s14   ;;  %s824_s13 = sphi %s876_s13, %s1089_s13   ;;  %s820_s12 = sphi %s874_s12, %s1088_s12  }
   0x6   : > { %p26_p0 = scmp.ge.s32.totalorder %s25_s21, 2  ;;  %s28_s22 = sadd.s32 1, %s844_s18 }
   0x7   : > { %s37_s23 = sadd.s32 1, %s828_s14  ;;  %p44_p1 = scmp.ne.s32.totalorder %s828_s14, %s824_s13 }
   0x8   : > { %s1096_s21 = smov (%p26_p0, %s25_s21), 0  ;;  %s1098_s22 = smov (!%p26_p0, %s28_s22), %s844_s18 }
   0x9   : > { %s33_s24 = ssub.s32 %s840_s17, %s1096_s21  ;;  %p45_p2 = scmp.eq.s32.totalorder %s848_s19, 0 }
   0xa   : > { %p30_p3 = scmp.ge.s32.totalorder %s1098_s22, 2  ;;  %p50_p4 = scmp.ne.s32.totalorder %s824_s13, %s820_s12 }
   0xb   : > { %p925_p5 = por %p45_p2, %p44_p1  ;;  %p51_p6 = scmp.eq.s32.totalorder %s588_s20, 0 }
   0xc   : > { %s1100_s22 = smov (%p30_p3, %s1098_s22), 0  ;;  %p685_p8 = scmp.lt.s32.totalorder %s848_s19, 4 }
   0xd   : > { %p931_p7 = por %p51_p6, %p50_p4  ;;  %s32_s27 = ssub.s32 %s844_s18, %s1100_s22 }
   0xe   : > { %s34_s28 = sor.u32 %s33_s24, %s32_s27  ;;  %s150_s29 = sand.u32 1, %s828_s14  }
   0xf   : > { %p35_p9 = scmp.eq.s32.totalorder %s34_s28, 0  ;;  %s592_s30 = sshll.u32 %s150_s29, 5 }
  0x10   : > { %s593_s4 = sshll.u32 %s844_s18, 3  ;;  %s154_s8 = scalar_lea.vmem [#allocation2], %s592_s30 }
  0x11   : > { %s941_s5 = scalar_select %p35_p9, %s828_s14, %s37_s23  }
  0x12   : > { %s159_s6 = sadd.s32 %s840_s17, %s593_s4  ;;  %s162_s9 = sshll.u32 %s154_s8, 4  ;;  %s163_s9 = int_to_ptr.vmem [resolvable:$true] %s162_s9 }
  0x13   : > { %s594_s7 = sshll.u32 %s159_s6, 7  ;;  %p951_p10 = pnand %p685_p8, %p925_p5 }
  0x14   : > { %s161_s12 = scalar_lea.hbm %s1081_s0, %s594_s7  ;;  %p595_p11 = scmp.ge.s32.totalorder %s848_s19, 1 }
  0x15   : > { %s151_s24 = scalar_lea.sflag [#allocation3], %s150_s29  ;;  %p756_p12 = pneg %p951_p10 }
  0x16   : > { %s767_s23 = scalar_lea.vmem %s163_s9, 512  ;;  %s850_s27 = smov [#allocation2]  }
  0x17   : > { %p768_p13 = scmp.ne.s32.totalorder %s163_s9, %s767_s23  ;;  %s772_s28 = sshll.u32 %s850_s27, 4  ;;  %s773_s28 = int_to_ptr.vmem [resolvable:$false] %s772_s28 }
  0x18   : > { %s774_s30 = scalar_lea.vmem %s773_s28, 1024  ;;  %p775_p2 = scmp.lt.s32.totalorder %s163_s9, %s773_s28 }
  0x19   : > { %p770_p0 = pnand %p768_p13, %p756_p12  ;;  %p776_p3 = scmp.lt.s32.totalorder %s774_s30, %s767_s23 }
  0x1b   : > { %p771_p1 = pneg %p770_p0  ;;  %p777_p4 = por %p776_p3, %p775_p2 }
  0x1d   : > { %p778_p5 = pnand %p777_p4, %p771_p1 }
  0x1f   : > { %781 = shalt.err (!%p778_p5)
}
  0x20   : > { %s851_s25 = smov 256   ;;  %s852_s29 = smov 128  }
  0x21   : > { %s853_s4 = smov 8   ;;  %p170_p6 = scmp.lt.s32.totalorder %s848_s19, 5 }
  0x22   : > { %684 = dma.hbm_to_vmem [thread:$0]  (!%p951_p10), %s161_s12, 512, %s163_s9, %s151_s24, %s851_s25, %s852_s29, %s853_s4  }
  0x23   : > { %p171_p8 = pnand %p595_p11, %p170_p6 }
  0x24   : > { %s176_s6 = sand.u32 (!%p171_p8), 1, %s824_s13  }
  0x25   : > { %174 = sbr.rel (%p171_p8) target bundleno = 429 (0x1ad), region = 32  ;;  %s596_s7 = sshll.u32 (!%p171_p8), %s176_s6, 5 }
  0x26   : > { %s177_s8 = scalar_lea.sflag (!%p171_p8), [#allocation3], %s176_s6  ;;  %s180_s10 = scalar_lea.vmem (!%p171_p8), [#allocation2], %s596_s7 }
  0x2a   : > { %815 = dma.done.wait (%p931_p7), %s177_s8, 512  }
  0x2b   : > { %817 = vsyncadd (%p931_p7), %s177_s8, 4294966784  ;;  %v217_v0 = vld [vmem:[%s180_s10] sm:$0xff]  ;;  %v224_v1 = vld [vmem:[%s1082_s1 + $0x18] sm:$0xff]  ;;  %vm264_vm0 = vcmask 261120   ;;  %s597_s28 = sshll.u32 %s832_s15, 4  ;;  %p208_p7 = scmp.lt.s32.totalorder %s836_s16, 1 }
  0x2c   : > { %232 = vxpose.xlu0.b32.start [1/4] (short) %v217_v0, 128  ;;  %v223_v2 = vld [vmem:[%s1082_s1 + $0x10] sm:$0xff]  ;;  %v218_v3 = vld [vmem:[%s180_s10 + $0x8] sm:$0xff]  ;;  %639 = vmatprep.subr.mxu0 %v224_v1  ;;  %v221_v5 = vld [vmem:[%s1082_s1] sm:$0xff]  ;;  %p210_p9 = scmp.lt.s32.totalorder %s597_s28, 31  ;;  %vm474_vm1 = vcmask 130048  }
  0x2d   : > { %671 = vmatprep.subr.mxu1 %v224_v1  ;;  %640 = vmatpush3.msra.mxu0 %v224_v1  ;;  %v222_v4 = vld [vmem:[%s1082_s1 + $0x8] sm:$0xff]  ;;  %v219_v6 = vld [vmem:[%s180_s10 + $0x10] sm:$0xff]  ;;  %v220_v7 = vld [vmem:[%s180_s10 + $0x18] sm:$0xff]  ;;  %s1102_s16 = smov (!%p208_p7, %s836_s16), 1 }
  0x2e   : > { %675 = vmatpush3.msra.mxu1 %v224_v1  ;;  %641 = vmatprep.subr.mxu0 %v223_v2  ;;  %s1104_s28 = smov (!%p210_p9, %s597_s28), 31  ;;  %s598_s30 = sshll.u32 %s1102_s16, 5  ;;  %v1002_v24 = vld [vmem:[%s1083_s2] ss:$0 sm:$0xff] }
  0x2f   : > { %672 = vmatprep.subr.mxu1 %v223_v2  ;;  %642 = vmatpush3.msra.mxu0 %v223_v2  ;;  %s213_s25 = sadd.s32 %s598_s30, %s1104_s28 }
  0x30   : > { %233 = vxpose.xlu0.b32.cont [2/4] (short) %v218_v3, 128  ;;  %643 = vmatprep.subr.mxu0 %v222_v4  ;;  %s599_s6 = sshll.u32 %s213_s25, 3 }
  0x31   : > { %676 = vmatpush3.msra.mxu1 %v223_v2  ;;  %644 = vmatpush3.msra.mxu0 %v222_v4  ;;  %s1008_s10 = scalar_lea.vmem %s1084_s3, %s599_s6 }
  0x32   : > { %673 = vmatprep.subr.mxu1 %v222_v4  ;;  %645 = vmatprep.subr.mxu0 %v221_v5 }
  0x33   : > { %677 = vmatpush3.msra.mxu1 %v222_v4  ;;  %646 = vmatpush3.msra.mxu0 %v221_v5 }
  0x34   : > { %234 = vxpose.xlu0.b32.cont [3/4] (short) %v219_v6, 128  ;;  %674 = vmatprep.subr.mxu1 %v221_v5 }
  0x35   : > { %678 = vmatpush3.msra.mxu1 %v221_v5 }
  0x38   : > { %235 = vxpose.xlu0.b32.end [4/4] (short) %v220_v7, 128 }
  0xa8   : > { %v248_v8 = vpop.trf.xlu0 }
  0xa9   : > { %647 = vmatprep.mubr.msk.f32.mxu0 %vm264_vm0, %v248_v8 }
  0xac   : > { %v249_v9 = vpop.trf.xlu0 }
  0xad   : > { %648 = vmatmul.mubr.msk.f32.vlgmr.msra.gmra.mxu0 %vm264_vm0, %v249_v9 }
  0xb0   : > { %v250_v10 = vpop.trf.xlu0 }
  0xb1   : > { %650 = vmatprep.mubr.msk.f32.mxu0 %vm264_vm0, %v250_v10 }
  0xb4   : > { %v251_v11 = vpop.trf.xlu0 }
  0xb5   : > { %651 = vmatmul.mubr.msk.f32.gmra.mxu0 %vm264_vm0, %v251_v11 }
  0xb8   : > { %v252_v12 = vpop.trf.xlu0 }
  0xb9   : > { %653 = vmatprep.mubr.msk.f32.mxu0 %vm264_vm0, %v252_v12 }
  0xbc   : > { %v253_v13 = vpop.trf.xlu0 }
  0xbd   : > { %654 = vmatmul.mubr.msk.f32.gmra.mxu0 %vm264_vm0, %v253_v13 }
  0xc0   : > { %v254_v14 = vpop.trf.xlu0 }
  0xc1   : > { %656 = vmatprep.mubr.msk.f32.mxu0 %vm264_vm0, %v254_v14 }
  0xc4   : > { %v255_v15 = vpop.trf.xlu0 }
  0xc5   : > { %657 = vmatmul.mubr.msk.f32.gmra.mxu0 %vm264_vm0, %v255_v15 }
  0xc8   : > { %v256_v16 = vpop.trf.xlu0 }
  0xc9   : > { %659 = vmatprep.mubr.msk.f32.mxu1 %vm264_vm0, %v256_v16 }
  0xcc   : > { %v257_v17 = vpop.trf.xlu0 }
  0xcd   : > { %660 = vmatmul.mubr.msk.f32.vlgmr.msra.gmra.mxu1 %vm264_vm0, %v257_v17 }
  0xd0   : > { %v258_v18 = vpop.trf.xlu0 }
  0xd1   : > { %662 = vmatprep.mubr.msk.f32.mxu1 %vm264_vm0, %v258_v18 }
  0xd4   : > { %v259_v19 = vpop.trf.xlu0 }
  0xd5   : > { %663 = vmatmul.mubr.msk.f32.gmra.mxu1 %vm264_vm0, %v259_v19 }
  0xd8   : > { %v260_v20 = vpop.trf.xlu0 }
  0xd9   : > { %665 = vmatprep.mubr.msk.f32.mxu1 %vm264_vm0, %v260_v20 }
  0xdc   : > { %v261_v21 = vpop.trf.xlu0 }
  0xdd   : > { %666 = vmatmul.mubr.msk.f32.gmra.mxu1 %vm264_vm0, %v261_v21 }
  0xe0   : > { %v262_v22 = vpop.trf.xlu0 }
  0xe1   : > { %668 = vmatprep.mubr.msk.f32.mxu1 %vm264_vm0, %v262_v22 }
  0xe4   : > { %v263_v23 = vpop.trf.xlu0 }
  0xe5   : > { %669 = vmatmul.mubr.msk.f32.gmra.mxu1 %vm264_vm0, %v263_v23 }
 0x16d   : > { %v649_v25 = vpop.f32.mrf.mxu0 }
 0x16e   : > { %v385_v26 = vadd.f32 %v649_v25, %v1002_v24 }
 0x16f   : > { %v379_v27 = vpop.f32.mrf.mxu0 }
 0x170   : > { %v459_v28 = vmax.f32 %v385_v26, 0.0  ;;  %v380_v29 = vadd.f32 %v1002_v24, %v379_v27 }
 0x172   : > { %476 = vst.msk [vmem:[%s1008_s10 + $0x8] sm:$0xff] %vm474_vm1, %v459_v28  ;;  %v458_v30 = vmax.f32 %v380_v29, 0.0 }
 0x174   : > { %475 = vst.msk [vmem:[%s1008_s10] sm:$0xff] %vm474_vm1, %v458_v30 }
 0x175   : > { %v652_v31 = vpop.f32.mrf.mxu0 }
 0x176   : > { %v395_v32 = vadd.f32 %v652_v31, %v1002_v24 }
 0x177   : > { %v389_v33 = vpop.f32.mrf.mxu0 }
 0x178   : > { %v461_v34 = vmax.f32 %v395_v32, 0.0  ;;  %v390_v35 = vadd.f32 %v1002_v24, %v389_v33 }
 0x17a   : > { %478 = vst.msk [vmem:[%s1008_s10 + $0x18] sm:$0xff] %vm474_vm1, %v461_v34  ;;  %v460_v36 = vmax.f32 %v390_v35, 0.0 }
 0x17c   : > { %477 = vst.msk [vmem:[%s1008_s10 + $0x10] sm:$0xff] %vm474_vm1, %v460_v36 }
 0x17d   : > { %v655_v37 = vpop.f32.mrf.mxu0 }
 0x17e   : > { %v405_v38 = vadd.f32 %v655_v37, %v1002_v24 }
 0x17f   : > { %v399_v39 = vpop.f32.mrf.mxu0 }
 0x180   : > { %v463_v40 = vmax.f32 %v405_v38, 0.0  ;;  %v400_v41 = vadd.f32 %v1002_v24, %v399_v39 }
 0x182   : > { %480 = vst.msk [vmem:[%s1008_s10 + $0x28] sm:$0xff] %vm474_vm1, %v463_v40  ;;  %v462_v42 = vmax.f32 %v400_v41, 0.0 }
 0x184   : > { %479 = vst.msk [vmem:[%s1008_s10 + $0x20] sm:$0xff] %vm474_vm1, %v462_v42 }
 0x185   : > { %v658_v43 = vpop.f32.mrf.mxu0 }
 0x186   : > { %v415_v44 = vadd.f32 %v658_v43, %v1002_v24 }
 0x187   : > { %v409_v45 = vpop.f32.mrf.mxu0 }
 0x188   : > { %v465_v46 = vmax.f32 %v415_v44, 0.0  ;;  %v410_v47 = vadd.f32 %v1002_v24, %v409_v45 }
 0x18a   : > { %482 = vst.msk [vmem:[%s1008_s10 + $0x38] sm:$0xff] %vm474_vm1, %v465_v46  ;;  %v464_v48 = vmax.f32 %v410_v47, 0.0 }
 0x18c   : > { %481 = vst.msk [vmem:[%s1008_s10 + $0x30] sm:$0xff] %vm474_vm1, %v464_v48 }
 0x18d   : > { %v661_v49 = vpop.f32.mrf.mxu1 }
 0x18e   : > { %v425_v50 = vadd.f32 %v661_v49, %v1002_v24 }
 0x18f   : > { %v419_v51 = vpop.f32.mrf.mxu1 }
 0x190   : > { %v467_v52 = vmax.f32 %v425_v50, 0.0  ;;  %v420_v53 = vadd.f32 %v1002_v24, %v419_v51 }
 0x192   : > { %484 = vst.msk [vmem:[%s1008_s10 + $0x48] sm:$0xff] %vm474_vm1, %v467_v52  ;;  %v466_v54 = vmax.f32 %v420_v53, 0.0 }
 0x194   : > { %483 = vst.msk [vmem:[%s1008_s10 + $0x40] sm:$0xff] %vm474_vm1, %v466_v54 }
 0x195   : > { %v664_v55 = vpop.f32.mrf.mxu1 }
 0x196   : > { %v435_v56 = vadd.f32 %v664_v55, %v1002_v24 }
 0x197   : > { %v429_v57 = vpop.f32.mrf.mxu1 }
 0x198   : > { %v469_v58 = vmax.f32 %v435_v56, 0.0  ;;  %v430_v59 = vadd.f32 %v1002_v24, %v429_v57 }
 0x19a   : > { %486 = vst.msk [vmem:[%s1008_s10 + $0x58] sm:$0xff] %vm474_vm1, %v469_v58  ;;  %v468_v60 = vmax.f32 %v430_v59, 0.0 }
 0x19c   : > { %485 = vst.msk [vmem:[%s1008_s10 + $0x50] sm:$0xff] %vm474_vm1, %v468_v60 }
 0x19d   : > { %v667_v61 = vpop.f32.mrf.mxu1 }
 0x19e   : > { %v445_v62 = vadd.f32 %v667_v61, %v1002_v24 }
 0x19f   : > { %v439_v63 = vpop.f32.mrf.mxu1 }
 0x1a0   : > { %v471_v0 = vmax.f32 %v445_v62, 0.0  ;;  %v440_v1 = vadd.f32 %v1002_v24, %v439_v63 }
 0x1a2   : > { %488 = vst.msk [vmem:[%s1008_s10 + $0x68] sm:$0xff] %vm474_vm1, %v471_v0  ;;  %v470_v2 = vmax.f32 %v440_v1, 0.0 }
 0x1a4   : > { %487 = vst.msk [vmem:[%s1008_s10 + $0x60] sm:$0xff] %vm474_vm1, %v470_v2 }
 0x1a5   : > { %v670_v3 = vpop.f32.mrf.mxu1 }
 0x1a6   : > { %v455_v4 = vadd.f32 %v670_v3, %v1002_v24 }
 0x1a7   : > { %v449_v5 = vpop.f32.mrf.mxu1 }
 0x1a8   : > { %v473_v6 = vmax.f32 %v455_v4, 0.0  ;;  %v450_v7 = vadd.f32 %v1002_v24, %v449_v5 }
 0x1aa   : > { %490 = vst.msk [vmem:[%s1008_s10 + $0x78] sm:$0xff] %vm474_vm1, %v473_v6  ;;  %v472_v8 = vmax.f32 %v450_v7, 0.0 }
 0x1ac   : > { %489 = vst.msk [vmem:[%s1008_s10 + $0x70] sm:$0xff] %vm474_vm1, %v472_v8 }
 0x1ad PF: > { %s16_s19 = sadd.s32 1, %s848_s19   ;;  %s1088_s12 = smov %s824_s13 }
 0x1ae   : > { %p13_p10 = scmp.ge.s32.totalorder %s16_s19, 6   ;;  %s1089_s13 = smov %s828_s14 }
 0x1af   : > { %s1090_s14 = smov %s941_s5  ;;  %s1091_s15 = smov %s840_s17 }
 0x1b0   : > { %s1092_s16 = smov %s844_s18  ;;  %s1093_s17 = smov %s1096_s21 }
 0x1b1   : > { %s1094_s18 = smov %s1100_s22  ;;  %15 = sbr.rel (!%p13_p10) target bundleno = 5 (0x5), region = 72 }
 0x1b6   :  { %521 = vsyncpa [#allocation3], 1 }
 0x1b7   :  { %523 = vsyncpa [#allocation3 + $0x1], 1 }

</bundles_post_ra>
